<compile_context>
chip_gen: v6e
topology: v6e:2x2x1
jax: 0.10.0
libtpu: 0.0.40
codegen_flags: <defaults>
</compile_context>

<pallas_src>
import jax
import jax.numpy as jnp
from jax.experimental import pallas as pl
from jax.experimental.pallas import tpu as pltpu


def _round_up(x, m):
    return (x + m - 1) // m * m


def _tpu_generation():
    """Best-effort TPU generation detection from the device kind string."""
    try:
        kind = jax.devices()[0].device_kind.lower()
    except Exception:
        return None
    if "v7" in kind:
        return "v7x"
    if "v6" in kind:
        return "v6e"
    if "v5" in kind:
        return "v5e"
    return None


# (tm, tn, tk, vmem_cap_bytes). tm*tn/(tm+tn) must clear the HBM ridge
# (~240 / ~680 / ~310 FLOP/B on v5e / v6e / v7x respectively).
_TILE_TABLE = {
    "v5e": (768, 768, 512, 64 * 1024 * 1024),
    "v6e": (1536, 1536, 512, 64 * 1024 * 1024),
    "v7x": (1024, 1024, 512, 48 * 1024 * 1024),
    None: (1024, 1024, 512, 48 * 1024 * 1024),
}


def _make_row_linear_kernel(has_bias: bool, use_scratch: bool):
    """Kernel factory specialized on Python-static flags.

    use_scratch=False: output dtype is f32 -> accumulate directly in o_ref
    (the output block index is constant across the k axis, so the block stays
    resident in VMEM for the whole reduction).
    """

    def _mxu(x_ref, w_ref):
        # Canonical (tm, tk) x (tk, tn) contraction, f32 accumulation on the MXU.
        return jnp.dot(x_ref[...], w_ref[...], preferred_element_type=jnp.float32)

    if use_scratch:

        def _body(x_ref, w_ref, b_ref, o_ref, acc_ref):
            k = pl.program_id(2)

            @pl.when(k == 0)
            def _init():
                if has_bias:
                    acc_ref[...] = jnp.broadcast_to(b_ref[...], acc_ref.shape)
                else:
                    acc_ref[...] = jnp.zeros_like(acc_ref)

            acc_ref[...] += _mxu(x_ref, w_ref)

            @pl.when(k == pl.num_programs(2) - 1)
            def _store():
                o_ref[...] = acc_ref[...].astype(o_ref.dtype)

        if has_bias:
            return _body
        return lambda x_ref, w_ref, o_ref, acc_ref: _body(
            x_ref, w_ref, None, o_ref, acc_ref
        )

    def _body_direct(x_ref, w_ref, b_ref, o_ref):
        k = pl.program_id(2)

        @pl.when(k == 0)
        def _init():
            if has_bias:
                o_ref[...] = jnp.broadcast_to(b_ref[...], o_ref.shape).astype(
                    o_ref.dtype
                )
            else:
                o_ref[...] = jnp.zeros_like(o_ref)

        o_ref[...] += _mxu(x_ref, w_ref)

    if has_bias:
        return _body_direct
    return lambda x_ref, w_ref, o_ref: _body_direct(x_ref, w_ref, None, o_ref)


def prepare_row_parallel_params(weight, bias=None, compute_dtype=jnp.bfloat16):
    """One-time parameter preprocessing (hoisted out of the per-call path).

    weight: [output_size, input_size]  ([N, K], PyTorch F.linear orientation)
    Returns (w_kn, b2d): w_kn is [K, N] in compute_dtype (N on the lane dim),
    b2d is (1, N) f32 or None.
    """
    w_kn = jnp.asarray(weight).astype(compute_dtype).T
    b2d = None
    if bias is not None:
        b2d = jnp.asarray(bias).astype(jnp.float32).reshape(1, -1)
    return w_kn, b2d


def row_parallel_linear_prepared(
    x,
    w_kn,
    b2d=None,
    *,
    compute_dtype=jnp.bfloat16,
    out_dtype=None,
    tm=None,
    tn=None,
    tk=None,
):
    """y = x @ w_kn + bias with w_kn = weight.T pre-prepared ([K, N], compute dtype).

    Note: compute_dtype=bf16 rounds operands to bf16 (f32 accumulation); pass
    compute_dtype=jnp.float32 for exact f32 F.linear parity (slower on the MXU).
    """
    *lead, K = x.shape
    K_w, N = w_kn.shape
    assert K == K_w, f"input feature mismatch: {K} vs {K_w}"

    M = 1
    for d in lead:
        M *= d

    out_dtype = x.dtype if out_dtype is None else jnp.dtype(out_dtype)
    cbytes = jnp.dtype(compute_dtype).itemsize
    obytes = jnp.dtype(out_dtype).itemsize
    sub = 16 if cbytes == 2 else 8

    gen = _tpu_generation()
    d_tm, d_tn, d_tk, vmem_cap = _TILE_TABLE.get(gen, _TILE_TABLE[None])
    tm = d_tm if tm is None else tm
    tn = d_tn if tn is None else tn
    tk = d_tk if tk is None else tk

    # Clamp tiles to the (aligned) problem size.
    tm = min(tm, _round_up(M, sub))
    tn = min(tn, _round_up(N, 128))
    tk = min(tk, _round_up(K, 128))

    # v7x has 2 TensorCores: a (1, 1, K/tk) grid idles half the chip. For
    # decode-shaped problems (grid_i == 1), split N across both cores.
    if gen == "v7x" and _round_up(M, sub) <= tm:
        n_pad = _round_up(N, 128)
        if n_pad >= 256 and tn >= n_pad:
            tn = _round_up(-(-n_pad // 2), 128)

    Mp, Np, Kp = _round_up(M, tm), _round_up(N, tn), _round_up(K, tk)

    x2d = x.reshape(M, K).astype(compute_dtype)
    if (Mp, Kp) != (M, K):
        x2d = jnp.pad(x2d, ((0, Mp - M), (0, Kp - K)))

    w2d = w_kn if w_kn.dtype == jnp.dtype(compute_dtype) else w_kn.astype(compute_dtype)
    if (Kp, Np) != (K, N):
        # TODO(synk): for static weights, pre-pad once at load time instead of per call.
        w2d = jnp.pad(w2d, ((0, Kp - K), (0, Np - N)))

    has_bias = b2d is not None
    if has_bias and Np != N:
        b2d = jnp.pad(b2d, ((0, 0), (0, Np - N)))

    # f32 output -> accumulate directly into the resident output block.
    use_scratch = jnp.dtype(out_dtype) != jnp.dtype(jnp.float32)

    grid = (Mp // tm, Np // tn, Kp // tk)
    gi, gj, gk = grid

    in_specs = [
        pl.BlockSpec((tm, tk), lambda i, j, k: (i, k)),  # x tile
        pl.BlockSpec((tk, tn), lambda i, j, k: (k, j)),  # weight [K, N] tile
    ]
    operands = [x2d, w2d]
    if has_bias:
        in_specs.append(pl.BlockSpec((1, tn), lambda i, j, k: (0, j)))  # bias tile
        operands.append(b2d)

    scratch_shapes = [pltpu.VMEM((tm, tn), jnp.float32)] if use_scratch else []

    # VMEM budget: double-buffered x/w (+ bias) + double-buffered output + acc.
    vmem_need = (
        2 * (tm * tk + tk * tn) * cbytes
        + 2 * tm * tn * obytes
        + (tm * tn * 4 if use_scratch else 0)
        + (2 * tn * 4 if has_bias else 0)
    )
    vmem_limit = int(min(vmem_cap, max(int(vmem_need * 1.25) + (2 << 20), 8 << 20)))

    cost = pl.CostEstimate(
        flops=2 * M * N * K,
        transcendentals=0,
        bytes_accessed=(
            Mp * Kp * cbytes * gj      # x re-read once per N-tile column
            + Kp * Np * cbytes * gi    # w re-read once per M-tile row
            + Mp * Np * obytes
            + (Np * 4 if has_bias else 0)
        ),
    )

    kernel = _make_row_linear_kernel(has_bias, use_scratch)

    out2d = pl.pallas_call(
        kernel,
        out_shape=jax.ShapeDtypeStruct((Mp, Np), out_dtype),
        grid_spec=pltpu.PrefetchScalarGridSpec(
            num_scalar_prefetch=0,
            grid=grid,
            in_specs=in_specs,
            out_specs=pl.BlockSpec((tm, tn), lambda i, j, k: (i, j)),
            scratch_shapes=scratch_shapes,
        ),
        compiler_params=pltpu.CompilerParams(
            dimension_semantics=("parallel", "parallel", "arbitrary"),
            vmem_limit_bytes=vmem_limit,
        ),
        cost_estimate=cost,
    )(*operands)

    if (Mp, Np) != (M, N):
        out2d = out2d[:M, :N]
    return out2d.reshape(*lead, N)


def row_parallel_linear(
    x,
    weight,
    bias=None,
    *,
    compute_dtype=jnp.bfloat16,
    out_dtype=None,
    tm=None,
    tn=None,
    tk=None,
):
    """y = F.linear(x, weight, bias); weight is [output_size, input_size].

    For repeated calls, preprocess parameters once with
    prepare_row_parallel_params() and call row_parallel_linear_prepared()
    to avoid the per-call weight cast/transpose HBM pass.
    """
    w_kn, b2d = prepare_row_parallel_params(weight, bias, compute_dtype)
    return row_parallel_linear_prepared(
        x, w_kn, b2d,
        compute_dtype=compute_dtype, out_dtype=out_dtype, tm=tm, tn=tn, tk=tk,
    )


if __name__ == "__main__":
    # Small shapes consistent with the module forward: x is [batch, seq, input_size].
    batch, seq, input_size, output_size = 2, 8, 256, 128

    key = jax.random.PRNGKey(0)
    kx, kw, kb = jax.random.split(key, 3)

    x = jax.random.normal(kx, (batch, seq, input_size), dtype=jnp.float32)
    # Deterministic synthetic parameters (no checkpoint load).
    weight = jax.random.normal(kw, (output_size, input_size), dtype=jnp.float32) * 0.02
    bias = jax.random.normal(kb, (output_size,), dtype=jnp.float32) * 0.01

    # One-time parameter preprocessing (bf16 cast + [N, K] -> [K, N] transpose).
    w_kn, b2d = prepare_row_parallel_params(weight, bias)

    y = row_parallel_linear_prepared(x, w_kn, b2d)
    y = jax.block_until_ready(y)

    # Reference with identical bf16 operand rounding + f32 accumulation.
    xb = x.astype(jnp.bfloat16).reshape(-1, input_size)
    wb = weight.astype(jnp.bfloat16)
    y_ref = (
        jnp.dot(xb, wb.T, preferred_element_type=jnp.float32).reshape(
            batch, seq, output_size
        )
        + bias
    ).astype(x.dtype)

    assert y.shape == (batch, seq, output_size)
    assert jnp.allclose(
        y.astype(jnp.float32), y_ref.astype(jnp.float32), atol=1e-3, rtol=1e-3
    ), "mismatch vs reference (bias)"

    # Also exercise the bias=None path (specialized kernel, no zeros DMA).
    y_nb = jax.block_until_ready(row_parallel_linear(x, weight, None))
    y_nb_ref = (
        jnp.dot(xb, wb.T, preferred_element_type=jnp.float32)
        .reshape(batch, seq, output_size)
        .astype(x.dtype)
    )
    assert jnp.allclose(
        y_nb.astype(jnp.float32), y_nb_ref.astype(jnp.float32), atol=1e-3, rtol=1e-3
    ), "mismatch vs reference (no bias)"

    print("KERNEL_OK")
</pallas_src>

<mosaic_0001>
module attributes {stable_mosaic.version = 11 : i64} {
  func.func @_body_direct(%arg0: i32, %arg1: i32, %arg2: i32, %arg3: memref<16x256xbf16, #tpu.memory_space<vmem>>, %arg4: memref<256x128xbf16, #tpu.memory_space<vmem>>, %arg5: memref<1x128xf32, #tpu.memory_space<vmem>>, %arg6: memref<16x128xf32, #tpu.memory_space<vmem>>) attributes {dimension_semantics = [#tpu.dimension_semantics<parallel>, #tpu.dimension_semantics<parallel>, #tpu.dimension_semantics<arbitrary>], iteration_bounds = array<i64: 1, 1, 1>, scalar_prefetch = 0 : i64, scratch_operands = 0 : i64, tpu.core_type = #tpu.core_type<tc>, window_params = [{transform_indices = @transform_0, window_bounds = array<i64: 16, 256>}, {transform_indices = @transform_1, window_bounds = array<i64: 256, 128>}, {transform_indices = @transform_2, window_bounds = array<i64: 1, 128>}, {transform_indices = @transform_3, window_bounds = array<i64: 16, 128>}]} {
    %c0_i32 = arith.constant 0 : i32
    %0 = arith.cmpi eq, %arg2, %c0_i32 : i32
    %1 = arith.extui %0 : i1 to i32
    %c0_i32_0 = arith.constant 0 : i32
    %2 = arith.cmpi ne, %1, %c0_i32_0 : i32
    scf.if %2 {
      %c0_8 = arith.constant 0 : index
      %c0_9 = arith.constant 0 : index
      %9 = vector.load %arg5[%c0_8, %c0_9] : memref<1x128xf32, #tpu.memory_space<vmem>>, vector<1x128xf32>
      %10 = vector.shape_cast %9 : vector<1x128xf32> to vector<1x128xf32>
      %11 = vector.broadcast %10 : vector<1x128xf32> to vector<16x128xf32>
      %c0_10 = arith.constant 0 : index
      %c0_11 = arith.constant 0 : index
      %12 = vector.load %arg6[%c0_10, %c0_11] : memref<16x128xf32, #tpu.memory_space<vmem>>, vector<16x128xf32>
      tpu.vector_store %arg6[%c0_10, %c0_11], %11 {strides = array<i32>} : memref<16x128xf32, #tpu.memory_space<vmem>>, vector<16x128xf32>,
    } else {
    }
    %c0 = arith.constant 0 : index
    %c0_1 = arith.constant 0 : index
    %3 = vector.load %arg6[%c0, %c0_1] : memref<16x128xf32, #tpu.memory_space<vmem>>, vector<16x128xf32>
    %c0_2 = arith.constant 0 : index
    %c0_3 = arith.constant 0 : index
    %4 = vector.load %arg3[%c0_2, %c0_3] : memref<16x256xbf16, #tpu.memory_space<vmem>>, vector<16x256xbf16>
    %c0_4 = arith.constant 0 : index
    %c0_5 = arith.constant 0 : index
    %5 = vector.load %arg4[%c0_4, %c0_5] : memref<256x128xbf16, #tpu.memory_space<vmem>>, vector<256x128xbf16>
    %cst = arith.constant dense<0.000000e+00> : vector<16x128xf32>
    %6 = tpu.matmul %4, %5, %cst {dimension_numbers = #tpu.dot_dimension_numbers<[1], [0], [0], [1], [0, 0, 1, 1], [], []>} : vector<16x256xbf16>, vector<256x128xbf16>, vector<16x128xf32> -> vector<16x128xf32>
    %7 = arith.addf %3, %6 : vector<16x128xf32>
    %c0_6 = arith.constant 0 : index
    %c0_7 = arith.constant 0 : index
    %8 = vector.load %arg6[%c0_6, %c0_7] : memref<16x128xf32, #tpu.memory_space<vmem>>, vector<16x128xf32>
    tpu.vector_store %arg6[%c0_6, %c0_7], %7 {strides = array<i32>} : memref<16x128xf32, #tpu.memory_space<vmem>>, vector<16x128xf32>,
    return
  }
  func.func @transform_0(%arg0: i32, %arg1: i32, %arg2: i32) -> (i32, i32) {
    %c0_i32 = arith.constant 0 : i32
    return %arg0, %arg2 : i32, i32
  }
  func.func @transform_1(%arg0: i32, %arg1: i32, %arg2: i32) -> (i32, i32) {
    %c0_i32 = arith.constant 0 : i32
    return %arg2, %arg1 : i32, i32
  }
  func.func @transform_2(%arg0: i32, %arg1: i32, %arg2: i32) -> (i32, i32) {
    %c0_i32 = arith.constant 0 : i32
    %c0_i32_0 = arith.constant 0 : i32
    return %c0_i32, %arg1 : i32, i32
  }
  func.func @transform_3(%arg0: i32, %arg1: i32, %arg2: i32) -> (i32, i32) {
    %c0_i32 = arith.constant 0 : i32
    return %arg0, %arg1 : i32, i32
  }
}

</mosaic_0001>

<bundles_post_ra>
// kernel: tpu_custom_call.1
= control target key start
LH: loop header
LB: loop body
LE: loop exit
PB: predicated region body
PF: predicated region fallthrough
CT: control target
= control target key end

     0   :  { %8 = vsyncpa [#allocation3], 0  ;;  %s440_s0 = inlined_call_operand.hbm [shape: bf16[16,256], index: 0, kind: input, shape index: {}]   ;;  %s441_s1 = inlined_call_operand.hbm [shape: bf16[256,128], index: 1, kind: input, shape index: {}]   ;;  %s442_s2 = inlined_call_operand.vmem [shape: f32[1,128], index: 2, kind: input, shape index: {}]   ;;  %s443_s3 = inlined_call_operand.hbm [shape: f32[16,128], index: 3, kind: output, shape index: {}]  }
   0x1   :  { %9 = vsyncpa [#allocation6], 0 }
   0x2   :  { %10 = vsyncpa [#allocation4], 0  ;;  %s395_s12 = smov [#allocation2]  }
   0x3   :  { %s16_s13 = sshll.u32 %s395_s12, 4  ;;  %s17_s13 = int_to_ptr.vmem [resolvable:$true] %s16_s13 }
   0x4   :  { %s337_s14 = scalar_lea.vmem %s17_s13, 256  ;;  %p342_p1 = scmp.lt.s32.totalorder %s17_s13, %s17_s13 }
   0x5   :  { %p338_p0 = scmp.ne.s32.totalorder %s17_s13, %s337_s14  ;;  %p343_p2 = scmp.lt.s32.totalorder %s337_s14, %s337_s14 }
   0x7   :  { %p344_p3 = por %p343_p2, %p342_p1 }
   0x9   :  { %p345_p4 = pnand %p344_p3, %p338_p0 }
   0xb   :  { %348 = shalt.err (!%p345_p4)
}
   0xc   :  { %s396_s15 = smov 128   ;;  %s397_s16 = smov 8  }
   0xd   :  { %22 = dma.hbm_to_vmem [thread:$0]  %s440_s0, 256, %s17_s13, [#allocation3], %s396_s15, %s396_s15, %s397_s16  }
   0xe   :  { %s398_s19 = smov [#allocation5]  }
   0xf   :  { %s28_s20 = sshll.u32 %s398_s19, 4  ;;  %s29_s20 = int_to_ptr.vmem [resolvable:$true] %s28_s20 }
  0x10   :  { %s357_s21 = scalar_lea.vmem %s29_s20, 2048  ;;  %p362_p6 = scmp.lt.s32.totalorder %s29_s20, %s29_s20 }
  0x11   :  { %p358_p5 = scmp.ne.s32.totalorder %s29_s20, %s357_s21  ;;  %p363_p7 = scmp.lt.s32.totalorder %s357_s21, %s357_s21 }
  0x13   :  { %p364_p8 = por %p363_p7, %p362_p6 }
  0x15   :  { %p365_p9 = pnand %p364_p8, %p358_p5 }
  0x17   :  { %368 = shalt.err (!%p365_p9)
}
  0x18   :  { %s399_s22 = smov 64   ;;  %s400_s23 = smov 4  }
  0x19   :  { %34 = dma.hbm_to_vmem [thread:$0]  %s441_s1, 2048, %s29_s20, [#allocation6], %s399_s22, %s399_s22, %s400_s23  }
  0x1a   :  { %389 = dma.done.wait [#allocation3], 256  }
  0x1b   :  { %390 = vsyncadd [#allocation3], 4294967040 }
  0x1c   :  { %391 = dma.done.wait [#allocation6], 2048  }
  0x1d   :  { %392 = vsyncadd [#allocation6], 4294965248  ;;  %v310_v0 = vld [vmem:[#allocation5 + $0x78] sm:$0xff]   ;;  %v312_v2 = vld [vmem:[#allocation5 + $0x70] sm:$0xff]   ;;  %s401_s26 = smov [#allocation7]  }
  0x1e   :  { %v311_v1 = vld [vmem:[#allocation5 + $0x38] sm:$0xff]   ;;  %281 = vmatprep.subr.bf16.mxu0 %v310_v0  ;;  %v313_v3 = vld [vmem:[#allocation5 + $0x30] sm:$0xff]   ;;  %v314_v4 = vld [vmem:[#allocation5 + $0x68] sm:$0xff]   ;;  %s249_s27 = sshll.u32 %s401_s26, 4  ;;  %s250_s27 = int_to_ptr.vmem [resolvable:$true] %s249_s27 }
  0x1f   :  { %282 = vmatpush3.bf16.msra.mxu0 %v311_v1  ;;  %v315_v5 = vld [vmem:[#allocation5 + $0x28] sm:$0xff]   ;;  %v316_v6 = vld [vmem:[#allocation5 + $0x60] sm:$0xff]   ;;  %v318_v8 = vld [vmem:[#allocation5 + $0x58] sm:$0xff]   ;;  %s369_s28 = scalar_lea.vmem %s250_s27, 256  ;;  %p374_p11 = scmp.lt.s32.totalorder %s250_s27, %s250_s27 }
  0x20   :  { %283 = vmatprep.subr.bf16.mxu0 %v312_v2  ;;  %v317_v7 = vld [vmem:[#allocation5 + $0x20] sm:$0xff]   ;;  %v319_v9 = vld [vmem:[#allocation5 + $0x18] sm:$0xff]   ;;  %v320_v10 = vld [vmem:[#allocation5 + $0x50] sm:$0xff]   ;;  %p370_p10 = scmp.ne.s32.totalorder %s250_s27, %s369_s28  ;;  %p375_p12 = scmp.lt.s32.totalorder %s369_s28, %s369_s28 }
  0x21   :  { %v328_v11 = vld [vmem:[#allocation2 + $0x4] ss:$8 sps:$4 sm:$0xff]   ;;  %v322_v13 = vld [vmem:[#allocation5 + $0x48] sm:$0xff]   ;;  %v324_v15 = vld [vmem:[#allocation5 + $0x40] sm:$0xff]  }
  0x22   :  { %v321_v12 = vld [vmem:[#allocation5 + $0x10] sm:$0xff]   ;;  %231 = vmatprep.mubr.bf16.mxu0 %v328_v11  ;;  %v323_v14 = vld [vmem:[#allocation5 + $0x8] sm:$0xff]   ;;  %v325_v16 = vld [vmem:[#allocation5] sm:$0xff]   ;;  %p376_p13 = por %p375_p12, %p374_p11 }
  0x23   :  { %284 = vmatpush3.bf16.msra.mxu0 %v313_v3  ;;  %v326_v17 = vld [vmem:[#allocation2] ss:$8 sps:$4 sm:$0xff]  }
  0x24   :  { %285 = vmatprep.subr.bf16.mxu0 %v314_v4  ;;  %v262_v19 = vld [vmem:[%s442_s2] ss:$0 sm:$0xff]  ;;  %p377_p0 = pnand %p376_p13, %p370_p10 }
  0x27   :  { %286 = vmatpush3.bf16.msra.mxu0 %v315_v5 }
  0x28   :  { %287 = vmatprep.subr.bf16.mxu0 %v316_v6 }
  0x2b   :  { %288 = vmatpush3.bf16.msra.mxu0 %v317_v7 }
  0x2c   :  { %289 = vmatprep.subr.bf16.mxu0 %v318_v8 }
  0x2f   :  { %290 = vmatpush3.bf16.msra.mxu0 %v319_v9 }
  0x30   :  { %291 = vmatprep.subr.bf16.mxu0 %v320_v10 }
  0x33   :  { %292 = vmatpush3.bf16.msra.mxu0 %v321_v12 }
  0x34   :  { %293 = vmatprep.subr.bf16.mxu0 %v322_v13 }
  0x37   :  { %294 = vmatpush3.bf16.msra.mxu0 %v323_v14 }
  0x38   :  { %295 = vmatprep.subr.bf16.mxu0 %v324_v15 }
  0x3b   :  { %296 = vmatpush3.bf16.msra.mxu0 %v325_v16 }
  0x3e   :  { %232 = vmatmul.mubr.bf16.vlgmr.msra.gmra.mxu0 %v326_v17 }
  0xfe   :  { %v297_v18 = vpop.f32.mrf.mxu0 }
 0x100   :  { %v298_v20 = vpop.f32.mrf.mxu0 }
 0x101   :  { %v299_v21 = vadd.f32 %v298_v20, %v297_v18 }
 0x102   :  { %v300_v22 = vpop.f32.mrf.mxu0 }
 0x103   :  { %v240_v23 = vadd.f32 %v299_v21, %v262_v19 }
 0x104   :  { %v301_v24 = vpop.f32.mrf.mxu0 }
 0x105   :  { %242 = vst [vmem:[#allocation7] sm:$0xff] %v240_v23  ;;  %v302_v25 = vadd.f32 %v301_v24, %v300_v22 }
 0x107   :  { %v241_v26 = vadd.f32 %v302_v25, %v262_v19 }
 0x109   :  { %243 = vst [vmem:[#allocation7 + $0x8] sm:$0xff] %v241_v26 }
 0x10a   :  { %380 = shalt.err (!%p377_p0)
}
 0x10b   :  { %255 = dma.vmem_to_hbm [thread:$0]  %s250_s27, 256, %s443_s3, [#allocation4], %s396_s15, %s396_s15, %s397_s16  }
 0x10c   :  { %393 = dma.done.wait [#allocation4], 256  }
 0x10d   :  { %394 = vsyncadd [#allocation4], 4294967040 }
 0x10e   :  { %259 = vsyncpa [#allocation3], 1 }
 0x10f   :  { %260 = vsyncpa [#allocation6], 1 }
 0x110   :  { %261 = vsyncpa [#allocation4], 1 }

</bundles_post_ra>
